<compile_context>
chip_gen: v7x
topology: tpu7x:2x2x1
jax: 0.10.0
libtpu: 0.0.40
codegen_flags: <defaults>
</compile_context>

<pallas_src>
import functools

import jax
import jax.numpy as jnp
from jax.experimental import pallas as pl
from jax.experimental.pallas import tpu as pltpu

# Packed parameter slab layout (1-D f32, lives in SMEM):
#   [ 0:30)  W1 (5,6) row-major  -> W1[j,k] at j*6+k      (PyTorch layout: (out,in))
#   [30:35)  b1 (5,)
#   [35:45)  W2 (2,5) row-major  -> W2[j,k] at 35+j*5+k
#   [45:47)  b2 (2,)
#   [47:49)  W3 (1,2)
#   [49]     b3
_W1_OFF, _B1_OFF = 0, 30
_W2_OFF, _B2_OFF = 35, 45
_W3_OFF, _B3_OFF = 47, 49
_PARAMS_LEN = 64  # padded to a round size


def ann_kernel(params_ref, xt_ref, ot_ref):
    # Dropout(p=0) is the identity -> skipped.
    # xt tile: (6, 8, L) -- each feature row is a full (8, L) block (dense vregs).
    # ot tile: (8, L)    -- sublane- and lane-dense stores.
    x = [xt_ref[k] for k in range(6)]          # six (8, L) full-vreg tiles

    # Layer 1: 6 -> 5, ReLU.  Scalar-broadcast FMAs (VPU), scalars from SMEM.
    h1 = []
    for j in range(5):
        acc = x[0] * params_ref[_W1_OFF + j * 6]
        for k in range(1, 6):
            acc = acc + x[k] * params_ref[_W1_OFF + j * 6 + k]
        h1.append(jnp.maximum(acc + params_ref[_B1_OFF + j], 0.0))

    # Layer 2: 5 -> 2, ReLU.
    h2 = []
    for j in range(2):
        acc = h1[0] * params_ref[_W2_OFF + j * 5]
        for k in range(1, 5):
            acc = acc + h1[k] * params_ref[_W2_OFF + j * 5 + k]
        h2.append(jnp.maximum(acc + params_ref[_B2_OFF + j], 0.0))

    # Layer 3: 2 -> 1, ReLU.
    y = h2[0] * params_ref[_W3_OFF] + h2[1] * params_ref[_W3_OFF + 1]
    ot_ref[...] = jnp.maximum(y + params_ref[_B3_OFF], 0.0)


def pack_params(w1, b1, w2, b2, w3, b3):
    """Pack PyTorch-layout (out,in) weights + (out,) biases into one f32 slab."""
    flat = jnp.concatenate([w1.reshape(-1), b1.reshape(-1),
                            w2.reshape(-1), b2.reshape(-1),
                            w3.reshape(-1), b3.reshape(-1)]).astype(jnp.float32)
    return jnp.pad(flat, (0, _PARAMS_LEN - flat.shape[0]))


def _round_up(n, m):
    return ((n + m - 1) // m) * m


def _cdiv(a, b):
    return -(-a // b)


@functools.partial(jax.jit, static_argnames=("tb",))
def ann_forward(x, params, tb=131072):
    """x: (B, 6) f32, params: packed slab from pack_params. Returns (B, 1) f32.

    tb = batch elements (lanes) per grid step; default 131072 keeps
    double-buffered blocks well under v5e's 16 MiB scoped-VMEM default while
    amortizing per-step overhead (3 MB input blocks)."""
    B = x.shape[0]
    # Pad only to a multiple of 1024 (8 sublanes x 128 lanes); padded rows are
    # zeros and are sliced off the output.  No full-tile zero slab is written.
    B_pad = _round_up(max(B, 1), 1024)
    C = B_pad // 8                                  # lane columns per sublane row

    # Lane-tile width L (block is (6, 8, L) in / (8, L) out).
    L = min(C, max(128, (tb // 8) // 128 * 128))
    # v7x megacore: make sure a large batch produces at least 2 grid steps.
    if C > 128 and _cdiv(C, L) < 2:
        L = min(C, max(128, _round_up(_cdiv(C, 2), 128)))
    grid = _cdiv(C, L)  # partial last block OK: garbage lanes are sliced off below

    # Layout plumbing: feature-major + (8, C) batch folding.  pad+transpose+reshape
    # fuse into a single XLA copy pass.
    # TODO(synk): accept feature-major (6, B) input from the producer so no
    # transpose materializes in HBM at all.
    xp = jnp.pad(x.astype(jnp.float32), ((0, B_pad - B), (0, 0)))
    xt = xp.T.reshape(6, 8, C)

    in_blk = 6 * 8 * L * 4
    out_blk = 8 * L * 4
    vmem_limit = min(max(2 * 2 * (in_blk + out_blk) + (2 << 20), 16 << 20),
                     100 << 20)

    out3 = pl.pallas_call(
        ann_kernel,
        out_shape=jax.ShapeDtypeStruct((8, C), jnp.float32),
        grid_spec=pltpu.PrefetchScalarGridSpec(
            num_scalar_prefetch=1,                          # params -> SMEM, resident
            grid=(grid,),
            in_specs=[pl.BlockSpec((6, 8, L), lambda i, _: (0, 0, i))],
            out_specs=pl.BlockSpec((8, L), lambda i, _: (0, i)),
        ),
        compiler_params=pltpu.CompilerParams(
            dimension_semantics=("parallel",),              # shard batch over TCs
            vmem_limit_bytes=vmem_limit,
        ),
    )(params, xt)

    # Invert the (8, C) folding: element (s, c) is batch index s*C + c.
    return out3.reshape(-1)[:B].reshape(B, 1)


def init_params(key):
    # Mimic nn.Linear init: W ~ U(-1/sqrt(fan_in), 1/sqrt(fan_in)), same for b.
    # PyTorch layout: W is (out_features, in_features), b is (out_features,).
    ks = jax.random.split(key, 6)

    def lin(kw, kb, fan_in, fan_out):
        bound = 1.0 / jnp.sqrt(jnp.float32(fan_in))
        w = jax.random.uniform(kw, (fan_out, fan_in), jnp.float32, -bound, bound)
        b = jax.random.uniform(kb, (fan_out,), jnp.float32, -bound, bound)
        return w, b

    w1, b1 = lin(ks[0], ks[1], 6, 5)
    w2, b2 = lin(ks[2], ks[3], 5, 2)
    w3, b3 = lin(ks[4], ks[5], 2, 1)
    return w1, b1, w2, b2, w3, b3


def reference_forward(x, w1, b1, w2, b2, w3, b3):
    h1 = jnp.maximum(x @ w1.T + b1, 0.0)
    h2 = jnp.maximum(h1 @ w2.T + b2, 0.0)
    return jnp.maximum(h2 @ w3.T + b3, 0.0)


if __name__ == "__main__":
    key = jax.random.PRNGKey(0)
    kx, kp = jax.random.split(key)
    B = 8
    x = jax.random.normal(kx, (B, 6), dtype=jnp.float32)
    w1, b1, w2, b2, w3, b3 = init_params(kp)
    params = pack_params(w1, b1, w2, b2, w3, b3)

    out = ann_forward(x, params)
    jax.block_until_ready(out)

    ref = reference_forward(x, w1, b1, w2, b2, w3, b3)
    assert out.shape == (B, 1)
    assert jnp.allclose(out, ref, atol=1e-5, rtol=1e-5)
    print("KERNEL_OK")
</pallas_src>

<mosaic_0001>
module attributes {stable_mosaic.version = 11 : i64} {
  func.func @ann_kernel(%arg0: i32, %arg1: memref<64xf32, #tpu.memory_space<smem>>, %arg2: memref<6x8x128xf32, #tpu.memory_space<vmem>>, %arg3: memref<8x128xf32, #tpu.memory_space<vmem>>) attributes {dimension_semantics = [#tpu.dimension_semantics<parallel>], iteration_bounds = array<i64: 1>, scalar_prefetch = 1 : i64, scratch_operands = 0 : i64, tpu.core_type = #tpu.core_type<tc>, window_params = [{transform_indices = @transform_0, window_bounds = array<i64: 6, 8, 128>}, {transform_indices = @transform_1, window_bounds = array<i64: 8, 128>}]} {
    %c0 = arith.constant 0 : index
    %c0_0 = arith.constant 0 : index
    %c0_1 = arith.constant 0 : index
    %0 = vector.load %arg2[%c0, %c0_0, %c0_1] : memref<6x8x128xf32, #tpu.memory_space<vmem>>, vector<1x8x128xf32>
    %1 = vector.shape_cast %0 : vector<1x8x128xf32> to vector<8x128xf32>
    %c1 = arith.constant 1 : index
    %c0_2 = arith.constant 0 : index
    %c0_3 = arith.constant 0 : index
    %2 = vector.load %arg2[%c1, %c0_2, %c0_3] : memref<6x8x128xf32, #tpu.memory_space<vmem>>, vector<1x8x128xf32>
    %3 = vector.shape_cast %2 : vector<1x8x128xf32> to vector<8x128xf32>
    %c2 = arith.constant 2 : index
    %c0_4 = arith.constant 0 : index
    %c0_5 = arith.constant 0 : index
    %4 = vector.load %arg2[%c2, %c0_4, %c0_5] : memref<6x8x128xf32, #tpu.memory_space<vmem>>, vector<1x8x128xf32>
    %5 = vector.shape_cast %4 : vector<1x8x128xf32> to vector<8x128xf32>
    %c3 = arith.constant 3 : index
    %c0_6 = arith.constant 0 : index
    %c0_7 = arith.constant 0 : index
    %6 = vector.load %arg2[%c3, %c0_6, %c0_7] : memref<6x8x128xf32, #tpu.memory_space<vmem>>, vector<1x8x128xf32>
    %7 = vector.shape_cast %6 : vector<1x8x128xf32> to vector<8x128xf32>
    %c4 = arith.constant 4 : index
    %c0_8 = arith.constant 0 : index
    %c0_9 = arith.constant 0 : index
    %8 = vector.load %arg2[%c4, %c0_8, %c0_9] : memref<6x8x128xf32, #tpu.memory_space<vmem>>, vector<1x8x128xf32>
    %9 = vector.shape_cast %8 : vector<1x8x128xf32> to vector<8x128xf32>
    %c5 = arith.constant 5 : index
    %c0_10 = arith.constant 0 : index
    %c0_11 = arith.constant 0 : index
    %10 = vector.load %arg2[%c5, %c0_10, %c0_11] : memref<6x8x128xf32, #tpu.memory_space<vmem>>, vector<1x8x128xf32>
    %11 = vector.shape_cast %10 : vector<1x8x128xf32> to vector<8x128xf32>
    %c0_12 = arith.constant 0 : index
    %12 = memref.load %arg1[%c0_12] : memref<64xf32, #tpu.memory_space<smem>>
    %13 = vector.broadcast %12 : f32 to vector<8x128xf32>
    %14 = arith.mulf %1, %13 : vector<8x128xf32>
    %c1_13 = arith.constant 1 : index
    %15 = memref.load %arg1[%c1_13] : memref<64xf32, #tpu.memory_space<smem>>
    %16 = vector.broadcast %15 : f32 to vector<8x128xf32>
    %17 = arith.mulf %3, %16 : vector<8x128xf32>
    %18 = arith.addf %14, %17 : vector<8x128xf32>
    %c2_14 = arith.constant 2 : index
    %19 = memref.load %arg1[%c2_14] : memref<64xf32, #tpu.memory_space<smem>>
    %20 = vector.broadcast %19 : f32 to vector<8x128xf32>
    %21 = arith.mulf %5, %20 : vector<8x128xf32>
    %22 = arith.addf %18, %21 : vector<8x128xf32>
    %c3_15 = arith.constant 3 : index
    %23 = memref.load %arg1[%c3_15] : memref<64xf32, #tpu.memory_space<smem>>
    %24 = vector.broadcast %23 : f32 to vector<8x128xf32>
    %25 = arith.mulf %7, %24 : vector<8x128xf32>
    %26 = arith.addf %22, %25 : vector<8x128xf32>
    %c4_16 = arith.constant 4 : index
    %27 = memref.load %arg1[%c4_16] : memref<64xf32, #tpu.memory_space<smem>>
    %28 = vector.broadcast %27 : f32 to vector<8x128xf32>
    %29 = arith.mulf %9, %28 : vector<8x128xf32>
    %30 = arith.addf %26, %29 : vector<8x128xf32>
    %c5_17 = arith.constant 5 : index
    %31 = memref.load %arg1[%c5_17] : memref<64xf32, #tpu.memory_space<smem>>
    %32 = vector.broadcast %31 : f32 to vector<8x128xf32>
    %33 = arith.mulf %11, %32 : vector<8x128xf32>
    %34 = arith.addf %30, %33 : vector<8x128xf32>
    %c30 = arith.constant 30 : index
    %35 = memref.load %arg1[%c30] : memref<64xf32, #tpu.memory_space<smem>>
    %36 = vector.broadcast %35 : f32 to vector<8x128xf32>
    %37 = arith.addf %34, %36 : vector<8x128xf32>
    %cst = arith.constant 0.000000e+00 : f32
    %38 = vector.broadcast %cst : f32 to vector<8x128xf32>
    %39 = arith.maximumf %37, %38 : vector<8x128xf32>
    %c6 = arith.constant 6 : index
    %40 = memref.load %arg1[%c6] : memref<64xf32, #tpu.memory_space<smem>>
    %41 = vector.broadcast %40 : f32 to vector<8x128xf32>
    %42 = arith.mulf %1, %41 : vector<8x128xf32>
    %c7 = arith.constant 7 : index
    %43 = memref.load %arg1[%c7] : memref<64xf32, #tpu.memory_space<smem>>
    %44 = vector.broadcast %43 : f32 to vector<8x128xf32>
    %45 = arith.mulf %3, %44 : vector<8x128xf32>
    %46 = arith.addf %42, %45 : vector<8x128xf32>
    %c8 = arith.constant 8 : index
    %47 = memref.load %arg1[%c8] : memref<64xf32, #tpu.memory_space<smem>>
    %48 = vector.broadcast %47 : f32 to vector<8x128xf32>
    %49 = arith.mulf %5, %48 : vector<8x128xf32>
    %50 = arith.addf %46, %49 : vector<8x128xf32>
    %c9 = arith.constant 9 : index
    %51 = memref.load %arg1[%c9] : memref<64xf32, #tpu.memory_space<smem>>
    %52 = vector.broadcast %51 : f32 to vector<8x128xf32>
    %53 = arith.mulf %7, %52 : vector<8x128xf32>
    %54 = arith.addf %50, %53 : vector<8x128xf32>
    %c10 = arith.constant 10 : index
    %55 = memref.load %arg1[%c10] : memref<64xf32, #tpu.memory_space<smem>>
    %56 = vector.broadcast %55 : f32 to vector<8x128xf32>
    %57 = arith.mulf %9, %56 : vector<8x128xf32>
    %58 = arith.addf %54, %57 : vector<8x128xf32>
    %c11 = arith.constant 11 : index
    %59 = memref.load %arg1[%c11] : memref<64xf32, #tpu.memory_space<smem>>
    %60 = vector.broadcast %59 : f32 to vector<8x128xf32>
    %61 = arith.mulf %11, %60 : vector<8x128xf32>
    %62 = arith.addf %58, %61 : vector<8x128xf32>
    %c31 = arith.constant 31 : index
    %63 = memref.load %arg1[%c31] : memref<64xf32, #tpu.memory_space<smem>>
    %64 = vector.broadcast %63 : f32 to vector<8x128xf32>
    %65 = arith.addf %62, %64 : vector<8x128xf32>
    %cst_18 = arith.constant 0.000000e+00 : f32
    %66 = vector.broadcast %cst_18 : f32 to vector<8x128xf32>
    %67 = arith.maximumf %65, %66 : vector<8x128xf32>
    %c12 = arith.constant 12 : index
    %68 = memref.load %arg1[%c12] : memref<64xf32, #tpu.memory_space<smem>>
    %69 = vector.broadcast %68 : f32 to vector<8x128xf32>
    %70 = arith.mulf %1, %69 : vector<8x128xf32>
    %c13 = arith.constant 13 : index
    %71 = memref.load %arg1[%c13] : memref<64xf32, #tpu.memory_space<smem>>
    %72 = vector.broadcast %71 : f32 to vector<8x128xf32>
    %73 = arith.mulf %3, %72 : vector<8x128xf32>
    %74 = arith.addf %70, %73 : vector<8x128xf32>
    %c14 = arith.constant 14 : index
    %75 = memref.load %arg1[%c14] : memref<64xf32, #tpu.memory_space<smem>>
    %76 = vector.broadcast %75 : f32 to vector<8x128xf32>
    %77 = arith.mulf %5, %76 : vector<8x128xf32>
    %78 = arith.addf %74, %77 : vector<8x128xf32>
    %c15 = arith.constant 15 : index
    %79 = memref.load %arg1[%c15] : memref<64xf32, #tpu.memory_space<smem>>
    %80 = vector.broadcast %79 : f32 to vector<8x128xf32>
    %81 = arith.mulf %7, %80 : vector<8x128xf32>
    %82 = arith.addf %78, %81 : vector<8x128xf32>
    %c16 = arith.constant 16 : index
    %83 = memref.load %arg1[%c16] : memref<64xf32, #tpu.memory_space<smem>>
    %84 = vector.broadcast %83 : f32 to vector<8x128xf32>
    %85 = arith.mulf %9, %84 : vector<8x128xf32>
    %86 = arith.addf %82, %85 : vector<8x128xf32>
    %c17 = arith.constant 17 : index
    %87 = memref.load %arg1[%c17] : memref<64xf32, #tpu.memory_space<smem>>
    %88 = vector.broadcast %87 : f32 to vector<8x128xf32>
    %89 = arith.mulf %11, %88 : vector<8x128xf32>
    %90 = arith.addf %86, %89 : vector<8x128xf32>
    %c32 = arith.constant 32 : index
    %91 = memref.load %arg1[%c32] : memref<64xf32, #tpu.memory_space<smem>>
    %92 = vector.broadcast %91 : f32 to vector<8x128xf32>
    %93 = arith.addf %90, %92 : vector<8x128xf32>
    %cst_19 = arith.constant 0.000000e+00 : f32
    %94 = vector.broadcast %cst_19 : f32 to vector<8x128xf32>
    %95 = arith.maximumf %93, %94 : vector<8x128xf32>
    %c18 = arith.constant 18 : index
    %96 = memref.load %arg1[%c18] : memref<64xf32, #tpu.memory_space<smem>>
    %97 = vector.broadcast %96 : f32 to vector<8x128xf32>
    %98 = arith.mulf %1, %97 : vector<8x128xf32>
    %c19 = arith.constant 19 : index
    %99 = memref.load %arg1[%c19] : memref<64xf32, #tpu.memory_space<smem>>
    %100 = vector.broadcast %99 : f32 to vector<8x128xf32>
    %101 = arith.mulf %3, %100 : vector<8x128xf32>
    %102 = arith.addf %98, %101 : vector<8x128xf32>
    %c20 = arith.constant 20 : index
    %103 = memref.load %arg1[%c20] : memref<64xf32, #tpu.memory_space<smem>>
    %104 = vector.broadcast %103 : f32 to vector<8x128xf32>
    %105 = arith.mulf %5, %104 : vector<8x128xf32>
    %106 = arith.addf %102, %105 : vector<8x128xf32>
    %c21 = arith.constant 21 : index
    %107 = memref.load %arg1[%c21] : memref<64xf32, #tpu.memory_space<smem>>
    %108 = vector.broadcast %107 : f32 to vector<8x128xf32>
    %109 = arith.mulf %7, %108 : vector<8x128xf32>
    %110 = arith.addf %106, %109 : vector<8x128xf32>
    %c22 = arith.constant 22 : index
    %111 = memref.load %arg1[%c22] : memref<64xf32, #tpu.memory_space<smem>>
    %112 = vector.broadcast %111 : f32 to vector<8x128xf32>
    %113 = arith.mulf %9, %112 : vector<8x128xf32>
    %114 = arith.addf %110, %113 : vector<8x128xf32>
    %c23 = arith.constant 23 : index
    %115 = memref.load %arg1[%c23] : memref<64xf32, #tpu.memory_space<smem>>
    %116 = vector.broadcast %115 : f32 to vector<8x128xf32>
    %117 = arith.mulf %11, %116 : vector<8x128xf32>
    %118 = arith.addf %114, %117 : vector<8x128xf32>
    %c33 = arith.constant 33 : index
    %119 = memref.load %arg1[%c33] : memref<64xf32, #tpu.memory_space<smem>>
    %120 = vector.broadcast %119 : f32 to vector<8x128xf32>
    %121 = arith.addf %118, %120 : vector<8x128xf32>
    %cst_20 = arith.constant 0.000000e+00 : f32
    %122 = vector.broadcast %cst_20 : f32 to vector<8x128xf32>
    %123 = arith.maximumf %121, %122 : vector<8x128xf32>
    %c24 = arith.constant 24 : index
    %124 = memref.load %arg1[%c24] : memref<64xf32, #tpu.memory_space<smem>>
    %125 = vector.broadcast %124 : f32 to vector<8x128xf32>
    %126 = arith.mulf %1, %125 : vector<8x128xf32>
    %c25 = arith.constant 25 : index
    %127 = memref.load %arg1[%c25] : memref<64xf32, #tpu.memory_space<smem>>
    %128 = vector.broadcast %127 : f32 to vector<8x128xf32>
    %129 = arith.mulf %3, %128 : vector<8x128xf32>
    %130 = arith.addf %126, %129 : vector<8x128xf32>
    %c26 = arith.constant 26 : index
    %131 = memref.load %arg1[%c26] : memref<64xf32, #tpu.memory_space<smem>>
    %132 = vector.broadcast %131 : f32 to vector<8x128xf32>
    %133 = arith.mulf %5, %132 : vector<8x128xf32>
    %134 = arith.addf %130, %133 : vector<8x128xf32>
    %c27 = arith.constant 27 : index
    %135 = memref.load %arg1[%c27] : memref<64xf32, #tpu.memory_space<smem>>
    %136 = vector.broadcast %135 : f32 to vector<8x128xf32>
    %137 = arith.mulf %7, %136 : vector<8x128xf32>
    %138 = arith.addf %134, %137 : vector<8x128xf32>
    %c28 = arith.constant 28 : index
    %139 = memref.load %arg1[%c28] : memref<64xf32, #tpu.memory_space<smem>>
    %140 = vector.broadcast %139 : f32 to vector<8x128xf32>
    %141 = arith.mulf %9, %140 : vector<8x128xf32>
    %142 = arith.addf %138, %141 : vector<8x128xf32>
    %c29 = arith.constant 29 : index
    %143 = memref.load %arg1[%c29] : memref<64xf32, #tpu.memory_space<smem>>
    %144 = vector.broadcast %143 : f32 to vector<8x128xf32>
    %145 = arith.mulf %11, %144 : vector<8x128xf32>
    %146 = arith.addf %142, %145 : vector<8x128xf32>
    %c34 = arith.constant 34 : index
    %147 = memref.load %arg1[%c34] : memref<64xf32, #tpu.memory_space<smem>>
    %148 = vector.broadcast %147 : f32 to vector<8x128xf32>
    %149 = arith.addf %146, %148 : vector<8x128xf32>
    %cst_21 = arith.constant 0.000000e+00 : f32
    %150 = vector.broadcast %cst_21 : f32 to vector<8x128xf32>
    %151 = arith.maximumf %149, %150 : vector<8x128xf32>
    %c35 = arith.constant 35 : index
    %152 = memref.load %arg1[%c35] : memref<64xf32, #tpu.memory_space<smem>>
    %153 = vector.broadcast %152 : f32 to vector<8x128xf32>
    %154 = arith.mulf %39, %153 : vector<8x128xf32>
    %c36 = arith.constant 36 : index
    %155 = memref.load %arg1[%c36] : memref<64xf32, #tpu.memory_space<smem>>
    %156 = vector.broadcast %155 : f32 to vector<8x128xf32>
    %157 = arith.mulf %67, %156 : vector<8x128xf32>
    %158 = arith.addf %154, %157 : vector<8x128xf32>
    %c37 = arith.constant 37 : index
    %159 = memref.load %arg1[%c37] : memref<64xf32, #tpu.memory_space<smem>>
    %160 = vector.broadcast %159 : f32 to vector<8x128xf32>
    %161 = arith.mulf %95, %160 : vector<8x128xf32>
    %162 = arith.addf %158, %161 : vector<8x128xf32>
    %c38 = arith.constant 38 : index
    %163 = memref.load %arg1[%c38] : memref<64xf32, #tpu.memory_space<smem>>
    %164 = vector.broadcast %163 : f32 to vector<8x128xf32>
    %165 = arith.mulf %123, %164 : vector<8x128xf32>
    %166 = arith.addf %162, %165 : vector<8x128xf32>
    %c39 = arith.constant 39 : index
    %167 = memref.load %arg1[%c39] : memref<64xf32, #tpu.memory_space<smem>>
    %168 = vector.broadcast %167 : f32 to vector<8x128xf32>
    %169 = arith.mulf %151, %168 : vector<8x128xf32>
    %170 = arith.addf %166, %169 : vector<8x128xf32>
    %c45 = arith.constant 45 : index
    %171 = memref.load %arg1[%c45] : memref<64xf32, #tpu.memory_space<smem>>
    %172 = vector.broadcast %171 : f32 to vector<8x128xf32>
    %173 = arith.addf %170, %172 : vector<8x128xf32>
    %cst_22 = arith.constant 0.000000e+00 : f32
    %174 = vector.broadcast %cst_22 : f32 to vector<8x128xf32>
    %175 = arith.maximumf %173, %174 : vector<8x128xf32>
    %c40 = arith.constant 40 : index
    %176 = memref.load %arg1[%c40] : memref<64xf32, #tpu.memory_space<smem>>
    %177 = vector.broadcast %176 : f32 to vector<8x128xf32>
    %178 = arith.mulf %39, %177 : vector<8x128xf32>
    %c41 = arith.constant 41 : index
    %179 = memref.load %arg1[%c41] : memref<64xf32, #tpu.memory_space<smem>>
    %180 = vector.broadcast %179 : f32 to vector<8x128xf32>
    %181 = arith.mulf %67, %180 : vector<8x128xf32>
    %182 = arith.addf %178, %181 : vector<8x128xf32>
    %c42 = arith.constant 42 : index
    %183 = memref.load %arg1[%c42] : memref<64xf32, #tpu.memory_space<smem>>
    %184 = vector.broadcast %183 : f32 to vector<8x128xf32>
    %185 = arith.mulf %95, %184 : vector<8x128xf32>
    %186 = arith.addf %182, %185 : vector<8x128xf32>
    %c43 = arith.constant 43 : index
    %187 = memref.load %arg1[%c43] : memref<64xf32, #tpu.memory_space<smem>>
    %188 = vector.broadcast %187 : f32 to vector<8x128xf32>
    %189 = arith.mulf %123, %188 : vector<8x128xf32>
    %190 = arith.addf %186, %189 : vector<8x128xf32>
    %c44 = arith.constant 44 : index
    %191 = memref.load %arg1[%c44] : memref<64xf32, #tpu.memory_space<smem>>
    %192 = vector.broadcast %191 : f32 to vector<8x128xf32>
    %193 = arith.mulf %151, %192 : vector<8x128xf32>
    %194 = arith.addf %190, %193 : vector<8x128xf32>
    %c46 = arith.constant 46 : index
    %195 = memref.load %arg1[%c46] : memref<64xf32, #tpu.memory_space<smem>>
    %196 = vector.broadcast %195 : f32 to vector<8x128xf32>
    %197 = arith.addf %194, %196 : vector<8x128xf32>
    %cst_23 = arith.constant 0.000000e+00 : f32
    %198 = vector.broadcast %cst_23 : f32 to vector<8x128xf32>
    %199 = arith.maximumf %197, %198 : vector<8x128xf32>
    %c47 = arith.constant 47 : index
    %200 = memref.load %arg1[%c47] : memref<64xf32, #tpu.memory_space<smem>>
    %201 = vector.broadcast %200 : f32 to vector<8x128xf32>
    %202 = arith.mulf %175, %201 : vector<8x128xf32>
    %c48 = arith.constant 48 : index
    %203 = memref.load %arg1[%c48] : memref<64xf32, #tpu.memory_space<smem>>
    %204 = vector.broadcast %203 : f32 to vector<8x128xf32>
    %205 = arith.mulf %199, %204 : vector<8x128xf32>
    %206 = arith.addf %202, %205 : vector<8x128xf32>
    %c49 = arith.constant 49 : index
    %207 = memref.load %arg1[%c49] : memref<64xf32, #tpu.memory_space<smem>>
    %208 = vector.broadcast %207 : f32 to vector<8x128xf32>
    %209 = arith.addf %206, %208 : vector<8x128xf32>
    %cst_24 = arith.constant 0.000000e+00 : f32
    %210 = vector.broadcast %cst_24 : f32 to vector<8x128xf32>
    %211 = arith.maximumf %209, %210 : vector<8x128xf32>
    %c0_25 = arith.constant 0 : index
    %c0_26 = arith.constant 0 : index
    %212 = vector.load %arg3[%c0_25, %c0_26] : memref<8x128xf32, #tpu.memory_space<vmem>>, vector<8x128xf32>
    tpu.vector_store %arg3[%c0_25, %c0_26], %211 {strides = array<i32>} : memref<8x128xf32, #tpu.memory_space<vmem>>, vector<8x128xf32>,
    return
  }
  func.func @transform_0(%arg0: i32, %arg1: memref<64xf32, #tpu.memory_space<smem>>) -> (i32, i32, i32) {
    %c0_i32 = arith.constant 0 : i32
    %c0_i32_0 = arith.constant 0 : i32
    %c0_i32_1 = arith.constant 0 : i32
    return %c0_i32, %c0_i32_0, %arg0 : i32, i32, i32
  }
  func.func @transform_1(%arg0: i32, %arg1: memref<64xf32, #tpu.memory_space<smem>>) -> (i32, i32) {
    %c0_i32 = arith.constant 0 : i32
    %c0_i32_0 = arith.constant 0 : i32
    return %c0_i32, %arg0 : i32, i32
  }
}

</mosaic_0001>

<bundles_post_ra>
// kernel: ann_forward.1
= control target key start
LH: loop header
LB: loop body
LE: loop exit
PB: predicated region body
PF: predicated region fallthrough
CT: control target
= control target key end

     0   :  { %s500_s0 = inlined_call_operand.vmem [shape: f32[64], index: 0, kind: input, shape index: {}]   ;;  %s501_s1 = inlined_call_operand.vmem [shape: f32[6,8,128], index: 1, kind: input, shape index: {}]   ;;  %s502_s2 = inlined_call_operand.vmem [shape: f32[8,128], index: 2, kind: output, shape index: {}]  }
   0x1   :  { %s7_s11 = sshll.u32 %s500_s0, 4  ;;  %s8_s11 = int_to_ptr.vmem [resolvable:$true] %s7_s11 }
   0x2   :  { %s278_s12 = scalar_lea.vmem %s8_s11, 16  ;;  %p283_p1 = scmp.lt.s32.totalorder %s8_s11, %s8_s11 }
   0x3   :  { %p279_p0 = scmp.ne.s32.totalorder %s8_s11, %s278_s12  ;;  %p284_p2 = scmp.lt.s32.totalorder %s278_s12, %s278_s12 }
   0x5   :  { %p285_p3 = por %p284_p2, %p283_p1 }
   0x7   :  { %p286_p4 = pnand %p285_p3, %p279_p0 }
   0x9   :  { %289 = shalt.err (!%p286_p4)  }
   0xa   :  { %s292_s13 = smov [#allocation3]  }
   0xb   :  { %10 = dma.vmem_to_smem %s8_s11, 16, %s292_s13, [#allocation2] }
   0xc   :  { %290 = dma.done.wait [#allocation2], 16 }
   0xd   :  { %291 = vsyncadd [#allocation2], 4294967280 }
   0xe   :  { %12 = sfence }
   0xf   :  { %s26_s14 = sld [smem:[#allocation3]]  ;;  %s228_s15 = sld [smem:[#allocation3 + $0x1]]  ;;  %v318_v0 = vld [vmem:[%s501_s1] sm:$0xff]  ;;  %v327_v1 = vld [vmem:[%s501_s1 + $0x8] sm:$0xff]  ;;  %v336_v2 = vld [vmem:[%s501_s1 + $0x10] sm:$0xff] }
  0x10   :  { %s229_s16 = sld [smem:[#allocation3 + $0x2]]  ;;  %s230_s17 = sld [smem:[#allocation3 + $0x3]]  ;;  %v345_v4 = vld [vmem:[%s501_s1 + $0x18] sm:$0xff]  ;;  %v353_v7 = vld [vmem:[%s501_s1 + $0x20] sm:$0xff]  ;;  %v369_v13 = vld [vmem:[%s501_s1 + $0x28] sm:$0xff] }
  0x11   :  { %s311_s18 = sld [smem:[#allocation3 + $0x4]]  ;;  %s313_s0 = sld [smem:[#allocation3 + $0x5]] }
  0x12   :  { %s320_s21 = sld [smem:[#allocation3 + $0x1e]]  ;;  %s329_s25 = sld [smem:[#allocation3 + $0x7]] }
  0x13   :  { %s322_s22 = sld [smem:[#allocation3 + $0x6]]  ;;  %s331_s26 = sld [smem:[#allocation3 + $0x8]] }
  0x14   :  { %s338_s29 = sld [smem:[#allocation3 + $0x9]]  ;;  %s340_s30 = sld [smem:[#allocation3 + $0xa]] }
  0x15   :  { %v27_v3 = vstv %s26_s14  ;;  %v30_v6 = vstv %s228_s15  ;;  %s348_s5 = sld [smem:[#allocation3 + $0xb]]  ;;  %s356_s8 = sld [smem:[#allocation3 + $0xc]] }
  0x16   :  { %v28_v5 = vmul.f32 %v27_v3, %v318_v0  ;;  %v31_v8 = vmul.f32 %v327_v1, %v30_v6  ;;  %v34_v9 = vstv %s229_s16  ;;  %v38_v10 = vstv %s230_s17  ;;  %s358_s9 = sld [smem:[#allocation3 + $0xd]]  ;;  %s362_s10 = sld [smem:[#allocation3 + $0xe]] }
  0x17   :  { %v35_v11 = vmul.f32 %v336_v2, %v34_v9  ;;  %v42_v12 = vstv %s311_s18  ;;  %s364_s11 = sld [smem:[#allocation3 + $0xf]]  ;;  %v39_v15 = vmul.f32 %v345_v4, %v38_v10  ;;  %v46_v16 = vstv %s313_s0  ;;  %s375_s15 = sld [smem:[#allocation3 + $0x10]] }
  0x18   :  { %v32_v14 = vadd.f32 %v31_v8, %v28_v5  ;;  %s373_s14 = sld [smem:[#allocation3 + $0x1f]]  ;;  %v43_v17 = vmul.f32 %v353_v7, %v42_v12  ;;  %v57_v19 = vstv %s329_s25  ;;  %s381_s16 = sld [smem:[#allocation3 + $0x11]]  ;;  %v47_v25 = vmul.f32 %v369_v13, %v46_v16 }
  0x19   :  { %v54_v18 = vstv %s322_s22  ;;  %v61_v20 = vstv %s331_s26  ;;  %s383_s1 = sld [smem:[#allocation3 + $0x12]]  ;;  %v58_v23 = vmul.f32 %v327_v1, %v57_v19  ;;  %s388_s17 = sld [smem:[#allocation3 + $0x13]]  ;;  %v50_v26 = vstv %s320_s21 }
  0x1a   :  { %v36_v21 = vadd.f32 %v35_v11, %v32_v14  ;;  %v55_v22 = vmul.f32 %v54_v18, %v318_v0  ;;  %v62_v24 = vmul.f32 %v336_v2, %v61_v20  ;;  %v65_v27 = vstv %s338_s29  ;;  %s394_s18 = sld [smem:[#allocation3 + $0x14]]  ;;  %s396_s0 = sld [smem:[#allocation3 + $0x15]] }
  0x1b   :  { %v69_v28 = vstv %s340_s30  ;;  %v66_v31 = vmul.f32 %v345_v4, %v65_v27  ;;  %v73_v32 = vstv %s348_s5  ;;  %v81_v34 = vstv %s356_s8  ;;  %s404_s19 = sld [smem:[#allocation3 + $0x20]]  ;;  %s406_s20 = sld [smem:[#allocation3 + $0x16]] }
  0x1c   :  { %v40_v29 = vadd.f32 %v39_v15, %v36_v21  ;;  %v59_v30 = vadd.f32 %v58_v23, %v55_v22  ;;  %v70_v33 = vmul.f32 %v353_v7, %v69_v28  ;;  %v84_v35 = vstv %s358_s9  ;;  %s410_s21 = sld [smem:[#allocation3 + $0x17]]  ;;  %s412_s22 = sld [smem:[#allocation3 + $0x18]] }
  0x1d   :  { %v88_v36 = vstv %s362_s10  ;;  %v82_v39 = vmul.f32 %v81_v34, %v318_v0  ;;  %v85_v40 = vmul.f32 %v327_v1, %v84_v35  ;;  %v74_v41 = vmul.f32 %v369_v13, %v73_v32  ;;  %s418_s23 = sld [smem:[#allocation3 + $0x19]]  ;;  %s420_s24 = sld [smem:[#allocation3 + $0x1a]] }
  0x1e   :  { %v44_v37 = vadd.f32 %v43_v17, %v40_v29  ;;  %v63_v38 = vadd.f32 %v62_v24, %v59_v30  ;;  %v89_v42 = vmul.f32 %v336_v2, %v88_v36  ;;  %v92_v43 = vstv %s364_s11  ;;  %s426_s25 = sld [smem:[#allocation3 + $0x1b]]  ;;  %s430_s26 = sld [smem:[#allocation3 + $0x1c]] }
  0x1f   :  { %v96_v44 = vstv %s375_s15  ;;  %v86_v47 = vadd.f32 %v85_v40, %v82_v39  ;;  %v93_v48 = vmul.f32 %v345_v4, %v92_v43  ;;  %v77_v49 = vstv %s373_s14  ;;  %s437_s27 = sld [smem:[#allocation3 + $0x1d]]  ;;  %s439_s28 = sld [smem:[#allocation3 + $0x23]] }
  0x20   :  { %v48_v45 = vadd.f32 %v47_v25, %v44_v37  ;;  %v67_v46 = vadd.f32 %v66_v31, %v63_v38  ;;  %v100_v50 = vstv %s381_s16  ;;  %v108_v51 = vstv %s383_s1  ;;  %s443_s29 = sld [smem:[#allocation3 + $0x21]]  ;;  %s449_s30 = sld [smem:[#allocation3 + $0x24]] }
  0x21   :  { %v90_v53 = vadd.f32 %v89_v42, %v86_v47  ;;  %v97_v54 = vmul.f32 %v353_v7, %v96_v44  ;;  %v109_v55 = vmul.f32 %v108_v51, %v318_v0  ;;  %v111_v57 = vstv %s388_s17  ;;  %s451_s3 = sld [smem:[#allocation3 + $0x25]]  ;;  %s458_s4 = sld [smem:[#allocation3 + $0x28]] }
  0x22   :  { %v71_v52 = vadd.f32 %v70_v33, %v67_v46  ;;  %v432_v56 = vadd.f32 %v50_v26, %v48_v45  ;;  %v115_v58 = vstv %s394_s18  ;;  %v119_v59 = vstv %s396_s0  ;;  %s460_s5 = sld [smem:[#allocation3 + $0x29]]  ;;  %s464_s6 = sld [smem:[#allocation3 + $0x26]] }
  0x23   :  { %v94_v61 = vadd.f32 %v93_v48, %v90_v53  ;;  %v101_v62 = vmul.f32 %v369_v13, %v100_v50  ;;  %v112_v63 = vmul.f32 %v327_v1, %v111_v57  ;;  %v104_v3 = vstv %s404_s19  ;;  %s470_s7 = sld [smem:[#allocation3 + $0x2a]]  ;;  %s472_s8 = sld [smem:[#allocation3 + $0x2b]] }
  0x24   :  { %v75_v60 = vadd.f32 %v74_v41, %v71_v52  ;;  %v116_v5 = vmul.f32 %v336_v2, %v115_v58  ;;  %v120_v6 = vmul.f32 %v345_v4, %v119_v59  ;;  %v123_v8 = vstv %s406_s20  ;;  %s475_s9 = sld [smem:[#allocation3 + $0x22]]  ;;  %s485_s10 = sld [smem:[#allocation3 + $0x27]] }
  0x25   :  { %v98_v10 = vadd.f32 %v97_v54, %v94_v61  ;;  %v113_v11 = vadd.f32 %v112_v63, %v109_v55  ;;  %v127_v12 = vstv %s410_s21  ;;  %v52_v14 = vmax.f32 %v432_v56, 0.0  ;;  %s487_s11 = sld [smem:[#allocation3 + $0x2c]]  ;;  %s267_s12 = sld [smem:[#allocation3 + $0x2d]] }
  0x26   :  { %v78_v9 = vadd.f32 %v77_v49, %v75_v60  ;;  %v135_v15 = vstv %s412_s22  ;;  %v138_v16 = vstv %s418_s23  ;;  %v142_v17 = vstv %s420_s24  ;;  %s273_s13 = sld [smem:[#allocation3 + $0x2e]]  ;;  %s274_s14 = sld [smem:[#allocation3 + $0x2f]] }
  0x27   :  { %v102_v18 = vadd.f32 %v101_v62, %v98_v10  ;;  %v117_v19 = vadd.f32 %v116_v5, %v113_v11  ;;  %v124_v20 = vmul.f32 %v353_v7, %v123_v8  ;;  %v136_v21 = vmul.f32 %v135_v15, %v318_v0  ;;  %s275_s15 = sld [smem:[#allocation3 + $0x30]]  ;;  %s276_s16 = sld [smem:[#allocation3 + $0x31]] }
  0x28   :  { %v128_v22 = vmul.f32 %v369_v13, %v127_v12  ;;  %v139_v23 = vmul.f32 %v327_v1, %v138_v16  ;;  %v143_v24 = vmul.f32 %v336_v2, %v142_v17  ;;  %v146_v25 = vstv %s426_s25 }
  0x29   :  { %v79_v26 = vmax.f32 %v78_v9, 0.0  ;;  %v105_v27 = vadd.f32 %v104_v3, %v102_v18  ;;  %v121_v0 = vadd.f32 %v120_v6, %v117_v19  ;;  %v150_v28 = vstv %s430_s26 }
  0x2a   :  { %v140_v29 = vadd.f32 %v139_v23, %v136_v21  ;;  %v147_v30 = vmul.f32 %v345_v4, %v146_v25  ;;  %v154_v1 = vstv %s437_s27  ;;  %v162_v31 = vstv %s439_s28 }
  0x2b   :  { %v106_v2 = vmax.f32 %v105_v27, 0.0  ;;  %v125_v32 = vadd.f32 %v124_v20, %v121_v0  ;;  %v131_v33 = vstv %s443_s29  ;;  %v163_v34 = vmul.f32 %v162_v31, %v52_v14 }
  0x2c   :  { %v144_v35 = vadd.f32 %v143_v24, %v140_v29  ;;  %v151_v36 = vmul.f32 %v353_v7, %v150_v28  ;;  %v165_v37 = vstv %s449_s30  ;;  %v169_v38 = vstv %s451_s3 }
  0x2d   :  { %v129_v39 = vadd.f32 %v128_v22, %v125_v32  ;;  %v155_v40 = vmul.f32 %v369_v13, %v154_v1  ;;  %v166_v4 = vmul.f32 %v165_v37, %v79_v26  ;;  %v170_v42 = vmul.f32 %v169_v38, %v106_v2 }
  0x2e   :  { %v148_v41 = vadd.f32 %v147_v30, %v144_v35  ;;  %v185_v43 = vstv %s458_s4  ;;  %v188_v44 = vstv %s460_s5  ;;  %v173_v49 = vstv %s464_s6 }
  0x2f   :  { %v132_v45 = vadd.f32 %v131_v33, %v129_v39  ;;  %v167_v7 = vadd.f32 %v166_v4, %v163_v34  ;;  %v186_v46 = vmul.f32 %v185_v43, %v52_v14  ;;  %v189_v47 = vmul.f32 %v188_v44, %v79_v26 }
  0x30   :  { %v152_v48 = vadd.f32 %v151_v36, %v148_v41  ;;  %v192_v50 = vstv %s470_s7  ;;  %v196_v13 = vstv %s472_s8  ;;  %v158_v52 = vstv %s475_s9 }
  0x31   :  { %v133_v51 = vmax.f32 %v132_v45, 0.0  ;;  %v190_v53 = vadd.f32 %v189_v47, %v186_v46  ;;  %v193_v54 = vmul.f32 %v192_v50, %v106_v2  ;;  %v171_v56 = vadd.f32 %v170_v42, %v167_v7 }
  0x32   :  { %v156_v55 = vadd.f32 %v155_v40, %v152_v48  ;;  %v177_v61 = vstv %s485_s10  ;;  %v200_v62 = vstv %s487_s11  ;;  %v181_v9 = vstv %s267_s12 }
  0x33   :  { %v174_v57 = vmul.f32 %v173_v49, %v133_v51  ;;  %v194_v58 = vadd.f32 %v193_v54, %v190_v53  ;;  %v197_v59 = vmul.f32 %v196_v13, %v133_v51  ;;  %v204_v10 = vstv %s273_s13 }
  0x34   :  { %v159_v60 = vadd.f32 %v158_v52, %v156_v55  ;;  %v208_v16 = vstv %s274_s14  ;;  %v211_v17 = vstv %s275_s15  ;;  %v215_v22 = vstv %s276_s16 }
  0x35   :  { %v175_v3 = vadd.f32 %v174_v57, %v171_v56  ;;  %v198_v5 = vadd.f32 %v197_v59, %v194_v58 }
  0x36   :  { %v160_v63 = vmax.f32 %v159_v60, 0.0 }
  0x38   :  { %v178_v6 = vmul.f32 %v177_v61, %v160_v63  ;;  %v201_v8 = vmul.f32 %v200_v62, %v160_v63 }
  0x3a   :  { %v179_v11 = vadd.f32 %v178_v6, %v175_v3  ;;  %v202_v12 = vadd.f32 %v201_v8, %v198_v5 }
  0x3c   :  { %v182_v14 = vadd.f32 %v181_v9, %v179_v11  ;;  %v205_v15 = vadd.f32 %v204_v10, %v202_v12 }
  0x3e   :  { %v183_v18 = vmax.f32 %v182_v14, 0.0  ;;  %v206_v19 = vmax.f32 %v205_v15, 0.0 }
  0x40   :  { %v209_v20 = vmul.f32 %v208_v16, %v183_v18  ;;  %v212_v21 = vmul.f32 %v211_v17, %v206_v19 }
  0x42   :  { %v213_v23 = vadd.f32 %v212_v21, %v209_v20 }
  0x44   :  { %v216_v24 = vadd.f32 %v215_v22, %v213_v23 }
  0x46   :  { %v217_v25 = vmax.f32 %v216_v24, 0.0 }
  0x48   :  { %218 = vst [vmem:[%s502_s2] sm:$0xff] %v217_v25 }

</bundles_post_ra>
